<compile_context>
chip_gen: v6e
topology: v6e:2x2x1
jax: 0.10.0
libtpu: 0.0.40
codegen_flags: <defaults>
</compile_context>

<pallas_src>
import numpy as np
import jax
import jax.numpy as jnp
from jax.experimental import pallas as pl
from jax.experimental.pallas import tpu as pltpu


# ---------------------------------------------------------------------------
# Host-side construction of the separable banded operators
# ---------------------------------------------------------------------------
def _gaussian_1d(scale):
    """1-D Gaussian matching AntiAliasInterpolation2d.__init__ (separable)."""
    sigma = (1.0 / scale - 1.0) / 2.0
    ks = 2 * round(sigma * 4) + 1          # always odd -> ka == kb
    ka = ks // 2
    ax = np.arange(ks, dtype=np.float64)
    mean = (ks - 1) / 2.0
    g = np.exp(-((ax - mean) ** 2) / (2.0 * sigma ** 2))
    g = g / g.sum()                        # outer(g, g) / sum == g1d x g1d
    return g, ks, ka


def _band_matrix(out_len, in_len, stride, g1d, ka):
    """Banded matrix fusing zero-pad + 1-D Gaussian conv + ::stride subsample.

    out[o] = sum_d g1d[d] * x[o*stride + d - ka]   (zero outside [0, in_len))
    """
    ks = g1d.shape[0]
    K = np.zeros((out_len, in_len), dtype=np.float64)
    for o in range(out_len):
        base = o * stride - ka
        lo = max(0, -base)
        hi = min(ks, in_len - base)
        for d in range(lo, hi):
            K[o, base + d] += g1d[d]
    return K.astype(np.float32)


# ---------------------------------------------------------------------------
# Device queries (best effort, safe fallbacks)
# ---------------------------------------------------------------------------
def _vmem_capacity_bytes():
    try:
        info = pltpu.get_tpu_info()
        cap = getattr(info, "vmem_capacity_bytes", None)
        if cap:
            return int(cap)
    except Exception:
        pass
    return 64 << 20                        # conservative default (v7x per-core VMEM)


def _num_tensorcores_per_device():
    try:
        dev = jax.devices()[0]
        for attr in ("num_cores", "core_count"):
            v = getattr(dev, attr, None)
            if isinstance(v, int) and v > 0:
                return v
        kind = (getattr(dev, "device_kind", "") or "").lower()
        if "v7" in kind or "7x" in kind:   # v7x: 2 TensorCores per chip
            return 2
    except Exception:
        pass
    return 1                               # v5e / v6e: single TensorCore


# ---------------------------------------------------------------------------
# Fused multi-scale Pallas kernel
# ---------------------------------------------------------------------------
def _make_pyramid_kernel(n_scales, fast, pb, H, W, out_hw, cdt):
    """One grid step = one (pb, H, W) plane block -> every scale's output block."""

    def kernel(*refs):
        x_ref = refs[2 * n_scales]
        out_refs = refs[2 * n_scales + 1:]
        # Horizontal operand with M = pb*H (free merge of leading dims when H % 8 == 0).
        x2 = x_ref[...].reshape(pb * H, W)

        for s in range(n_scales):
            k1 = refs[2 * s][...]          # Kv^T (H, Ho) on fast path, Kv (Ho, H) on fallback
            kht = refs[2 * s + 1][...]     # (W, Wo)
            o_ref = out_refs[s]
            Ho, Wo = out_hw[s]

            # Horizontal pass: one MXU matmul, M = pb*H, f32 accumulation.
            t = jnp.dot(x2, kht, preferred_element_type=jnp.float32).astype(cdt)

            if fast[s]:
                # Vertical pass as ONE matmul with M = pb*Wo (no Kv broadcast, no
                # per-plane mini-matmuls).  Only minor-dim transposes are used and
                # reshapes merge/split sublane-aligned dims.
                t4 = jnp.transpose(t.reshape(pb, H, Wo), (0, 2, 1)).reshape(pb * Wo, H)
                y = jnp.dot(t4, k1, preferred_element_type=jnp.float32)   # (pb*Wo, Ho)
                y = jnp.transpose(y.reshape(pb, Wo, Ho), (0, 2, 1))       # (pb, Ho, Wo)
                o_ref[...] = y.astype(o_ref.dtype)
            else:
                # Safe fallback for sublane-unfriendly shapes: per-plane 2-D dots
                # (still no broadcast_to of Kv, no batched einsum).
                t3 = t.reshape(pb, H, Wo)
                for p in range(pb):
                    y_p = jnp.dot(k1, t3[p], preferred_element_type=jnp.float32)
                    o_ref[p, :, :] = y_p.astype(o_ref.dtype)

        # TODO(synk): lane-dense (pb, Ho*Wo) output packing for Wo < 128 skipped:
        # output stores are <= 1/s^2 of the input HBM traffic here, and the pack
        # would add an in-VMEM relayout per scale.

    return kernel


def _fused_pyramid(x, scales):
    """x: (N, C, H, W); scales: non-unity scales. Returns {scale: (N, C, Ho, Wo)}."""
    N, C, H, W = x.shape
    P = N * C
    planes = x.reshape(P, H, W)            # free reshape, native dtype (no f32 upcast)
    cdt = planes.dtype
    isz = np.dtype(cdt).itemsize

    # Per-scale separable banded operators, cast to the compute dtype.
    ops, out_hw, fast = [], [], []
    for scale in scales:
        g1d, ks, ka = _gaussian_1d(scale)
        s = int(1.0 / scale)
        Ho, Wo = -(-H // s), -(-W // s)
        kv = _band_matrix(Ho, H, s, g1d, ka)              # (Ho, H)
        kht = _band_matrix(Wo, W, s, g1d, ka).T           # (W, Wo)
        f = (H % 8 == 0) and (Wo % 8 == 0)
        k1 = kv.T if f else kv                            # fast path consumes Kv^T
        ops += [jnp.asarray(k1, dtype=cdt), jnp.asarray(kht, dtype=cdt)]
        out_hw.append((Ho, Wo))
        fast.append(f)
    n_scales = len(scales)

    # ---- VMEM budget: account for every consumer, per chip generation ----------
    vmem_cap = _vmem_capacity_bytes()
    vmem_limit = int(min(vmem_cap * 7 // 8, 112 << 20))
    fixed = 0
    per_plane = 3 * H * W * isz                            # x block (2x dbuf) + loaded value
    for (Ho, Wo), f in zip(out_hw, fast):
        per_plane += 2 * Ho * Wo * isz                     # output block (2x dbuf)
        per_plane += 4 * (2 * H * Wo + 2 * Ho * Wo)        # f32 intermediates + transposed copies
        fixed += 2 * isz * (Ho * H + W * Wo)               # Kv / Kh^T double buffers (resident)
    budget = vmem_limit - fixed - (6 << 20)                # headroom for compiler scratch
    pb_cap = 256 if all(fast) else 32                      # bound the fallback unroll
    pb = int(max(1, min(P, pb_cap, budget // max(per_plane, 1))))
    # TODO(synk): spatial (H/W) tiling for images so large that a single plane
    # exceeds the VMEM budget is not implemented; pb just clamps to 1 there.

    # Only force multiple grid steps when the chip actually has >1 TensorCore.
    n_tc = _num_tensorcores_per_device()
    if n_tc > 1 and P >= 2:
        pb = max(1, min(pb, -(-P // n_tc)))

    # Prefer an exact divisor of P (avoid a partially wasted ragged last block),
    # but never shrink pb by more than 2x; no jnp.pad / slice HBM round trips.
    if P % pb:
        for cand in range(pb, max(pb // 2, 1) - 1, -1):
            if P % cand == 0:
                pb = cand
                break
    grid = pl.cdiv(P, pb)

    kernel = _make_pyramid_kernel(n_scales, fast, pb, H, W, out_hw, cdt)

    in_specs = []
    for (Ho, Wo), f in zip(out_hw, fast):
        k1_shape = (H, Ho) if f else (Ho, H)
        in_specs.append(pl.BlockSpec(k1_shape, lambda i: (0, 0)))     # resident operator
        in_specs.append(pl.BlockSpec((W, Wo), lambda i: (0, 0)))      # resident operator
    in_specs.append(pl.BlockSpec((pb, H, W), lambda i: (i, 0, 0)))    # plane block

    out_specs = [pl.BlockSpec((pb, Ho, Wo), lambda i: (i, 0, 0)) for (Ho, Wo) in out_hw]
    out_shape = tuple(jax.ShapeDtypeStruct((P, Ho, Wo), cdt) for (Ho, Wo) in out_hw)

    outs = pl.pallas_call(
        kernel,
        out_shape=out_shape,
        grid_spec=pltpu.PrefetchScalarGridSpec(
            num_scalar_prefetch=0,
            grid=(grid,),
            in_specs=in_specs,
            out_specs=out_specs,
        ),
        compiler_params=pltpu.CompilerParams(
            dimension_semantics=("parallel",),
            vmem_limit_bytes=vmem_limit,
        ),
    )(*ops, planes)

    if not isinstance(outs, (tuple, list)):
        outs = (outs,)
    return {sc: o.reshape(N, C, hw[0], hw[1])
            for sc, o, hw in zip(scales, outs, out_hw)}


# ---------------------------------------------------------------------------
# Module-level forward
# ---------------------------------------------------------------------------
def image_pyramide(x, scales):
    """Matches ImagePyramide.forward: dict of downsampled predictions."""
    non_unity = [s for s in scales if float(s) != 1.0]
    downs = _fused_pyramid(x, non_unity) if non_unity else {}
    out_dict = {}
    for scale in scales:
        dict_key = str(scale).replace('.', '-')               # nn.ModuleDict key
        out_key = 'prediction_' + dict_key.replace('-', '.')
        out_dict[out_key] = x if float(scale) == 1.0 else downs[scale]
    return out_dict


# ---------------------------------------------------------------------------
# Pure-JAX reference (lax depthwise conv) for verification
# ---------------------------------------------------------------------------
def _reference_downsample(x, scale):
    if float(scale) == 1.0:
        return x
    g1d, ks, ka = _gaussian_1d(scale)
    w2 = np.outer(g1d, g1d)
    w2 = (w2 / w2.sum()).astype(np.float32)
    N, C, H, W = x.shape
    wt = jnp.broadcast_to(jnp.asarray(w2)[None, None], (C, 1, ks, ks))
    xp = jnp.pad(x, ((0, 0), (0, 0), (ka, ka), (ka, ka)))
    out = jax.lax.conv_general_dilated(
        xp, wt, window_strides=(1, 1), padding='VALID',
        dimension_numbers=('NCHW', 'OIHW', 'NCHW'),
        feature_group_count=C)
    s = int(1.0 / scale)
    return out[:, :, ::s, ::s]


if __name__ == "__main__":
    scales = (1, 0.5, 0.25)
    num_channels = 4

    key = jax.random.PRNGKey(0)
    x = jax.random.normal(key, (2, num_channels, 16, 16), dtype=jnp.float32)

    outs = image_pyramide(x, scales)
    for v in outs.values():
        jax.block_until_ready(v)

    for scale in scales:
        got = outs['prediction_' + str(scale)]
        ref = _reference_downsample(x, scale)
        assert got.shape == ref.shape, (got.shape, ref.shape)
        np.testing.assert_allclose(np.asarray(got), np.asarray(ref),
                                   rtol=1e-4, atol=1e-5)

    print("KERNEL_OK")
</pallas_src>

<mosaic_0001>
module attributes {stable_mosaic.version = 11 : i64} {
  func.func @kernel(%arg0: i32, %arg1: memref<16x8xf32, #tpu.memory_space<vmem>>, %arg2: memref<16x8xf32, #tpu.memory_space<vmem>>, %arg3: memref<4x16xf32, #tpu.memory_space<vmem>>, %arg4: memref<16x4xf32, #tpu.memory_space<vmem>>, %arg5: memref<8x16x16xf32, #tpu.memory_space<vmem>>, %arg6: memref<8x8x8xf32, #tpu.memory_space<vmem>>, %arg7: memref<8x4x4xf32, #tpu.memory_space<vmem>>) attributes {dimension_semantics = [#tpu.dimension_semantics<parallel>], iteration_bounds = array<i64: 1>, scalar_prefetch = 0 : i64, scratch_operands = 0 : i64, tpu.core_type = #tpu.core_type<tc>, window_params = [{pipeline_mode = #tpu.pipeline_mode<synchronous>, transform_indices = @transform_0, window_bounds = array<i64: 16, 8>}, {pipeline_mode = #tpu.pipeline_mode<synchronous>, transform_indices = @transform_1, window_bounds = array<i64: 16, 8>}, {pipeline_mode = #tpu.pipeline_mode<synchronous>, transform_indices = @transform_2, window_bounds = array<i64: 4, 16>}, {pipeline_mode = #tpu.pipeline_mode<synchronous>, transform_indices = @transform_3, window_bounds = array<i64: 16, 4>}, {transform_indices = @transform_4, window_bounds = array<i64: 8, 16, 16>}, {transform_indices = @transform_5, window_bounds = array<i64: 8, 8, 8>}, {transform_indices = @transform_6, window_bounds = array<i64: 8, 4, 4>}]} {
    %c0 = arith.constant 0 : index
    %c0_0 = arith.constant 0 : index
    %c0_1 = arith.constant 0 : index
    %0 = vector.load %arg5[%c0, %c0_0, %c0_1] : memref<8x16x16xf32, #tpu.memory_space<vmem>>, vector<8x16x16xf32>
    %1 = vector.shape_cast %0 : vector<8x16x16xf32> to vector<128x16xf32>
    %c0_2 = arith.constant 0 : index
    %c0_3 = arith.constant 0 : index
    %2 = vector.load %arg1[%c0_2, %c0_3] : memref<16x8xf32, #tpu.memory_space<vmem>>, vector<16x8xf32>
    %c0_4 = arith.constant 0 : index
    %c0_5 = arith.constant 0 : index
    %3 = vector.load %arg2[%c0_4, %c0_5] : memref<16x8xf32, #tpu.memory_space<vmem>>, vector<16x8xf32>
    %cst = arith.constant dense<0.000000e+00> : vector<128x8xf32>
    %4 = tpu.matmul %1, %3, %cst {dimension_numbers = #tpu.dot_dimension_numbers<[1], [0], [0], [1], [0, 0, 1, 1], [], []>} : vector<128x16xf32>, vector<16x8xf32>, vector<128x8xf32> -> vector<128x8xf32>
    %5 = vector.shape_cast %4 : vector<128x8xf32> to vector<8x16x8xf32>
    %6 = tpu.transpose %5, [0, 2, 1] : vector<8x16x8xf32> -> vector<8x8x16xf32>
    %7 = vector.shape_cast %6 : vector<8x8x16xf32> to vector<64x16xf32>
    %cst_6 = arith.constant dense<0.000000e+00> : vector<64x8xf32>
    %8 = tpu.matmul %7, %2, %cst_6 {dimension_numbers = #tpu.dot_dimension_numbers<[1], [0], [0], [1], [0, 0, 1, 1], [], []>} : vector<64x16xf32>, vector<16x8xf32>, vector<64x8xf32> -> vector<64x8xf32>
    %9 = vector.shape_cast %8 : vector<64x8xf32> to vector<8x8x8xf32>
    %10 = tpu.transpose %9, [0, 2, 1] : vector<8x8x8xf32> -> vector<8x8x8xf32>
    %c0_7 = arith.constant 0 : index
    %c0_8 = arith.constant 0 : index
    %c0_9 = arith.constant 0 : index
    %11 = vector.load %arg6[%c0_7, %c0_8, %c0_9] : memref<8x8x8xf32, #tpu.memory_space<vmem>>, vector<8x8x8xf32>
    tpu.vector_store %arg6[%c0_7, %c0_8, %c0_9], %10 {strides = array<i32>} : memref<8x8x8xf32, #tpu.memory_space<vmem>>, vector<8x8x8xf32>,
    %c0_10 = arith.constant 0 : index
    %c0_11 = arith.constant 0 : index
    %12 = vector.load %arg3[%c0_10, %c0_11] : memref<4x16xf32, #tpu.memory_space<vmem>>, vector<4x16xf32>
    %c0_12 = arith.constant 0 : index
    %c0_13 = arith.constant 0 : index
    %13 = vector.load %arg4[%c0_12, %c0_13] : memref<16x4xf32, #tpu.memory_space<vmem>>, vector<16x4xf32>
    %cst_14 = arith.constant dense<0.000000e+00> : vector<128x4xf32>
    %14 = tpu.matmul %1, %13, %cst_14 {dimension_numbers = #tpu.dot_dimension_numbers<[1], [0], [0], [1], [0, 0, 1, 1], [], []>} : vector<128x16xf32>, vector<16x4xf32>, vector<128x4xf32> -> vector<128x4xf32>
    %15 = vector.shape_cast %14 : vector<128x4xf32> to vector<8x16x4xf32>
    %16 = vector.extract_strided_slice %15 {offsets = [0, 0, 0], sizes = [1, 16, 4], strides = [1, 1, 1]} : vector<8x16x4xf32> to vector<1x16x4xf32>
    %17 = vector.shape_cast %16 : vector<1x16x4xf32> to vector<16x4xf32>
    %cst_15 = arith.constant dense<0.000000e+00> : vector<4x4xf32>
    %18 = tpu.matmul %12, %17, %cst_15 {dimension_numbers = #tpu.dot_dimension_numbers<[1], [0], [0], [1], [0, 0, 1, 1], [], []>} : vector<4x16xf32>, vector<16x4xf32>, vector<4x4xf32> -> vector<4x4xf32>
    %c0_16 = arith.constant 0 : index
    %c0_17 = arith.constant 0 : index
    %c0_18 = arith.constant 0 : index
    %19 = vector.load %arg7[%c0_16, %c0_17, %c0_18] : memref<8x4x4xf32, #tpu.memory_space<vmem>>, vector<1x4x4xf32>
    %20 = vector.shape_cast %19 : vector<1x4x4xf32> to vector<4x4xf32>
    %21 = vector.shape_cast %18 : vector<4x4xf32> to vector<1x4x4xf32>
    tpu.vector_store %arg7[%c0_16, %c0_17, %c0_18], %21 {strides = array<i32>} : memref<8x4x4xf32, #tpu.memory_space<vmem>>, vector<1x4x4xf32>,
    %22 = vector.extract_strided_slice %15 {offsets = [1, 0, 0], sizes = [1, 16, 4], strides = [1, 1, 1]} : vector<8x16x4xf32> to vector<1x16x4xf32>
    %23 = vector.shape_cast %22 : vector<1x16x4xf32> to vector<16x4xf32>
    %cst_19 = arith.constant dense<0.000000e+00> : vector<4x4xf32>
    %24 = tpu.matmul %12, %23, %cst_19 {dimension_numbers = #tpu.dot_dimension_numbers<[1], [0], [0], [1], [0, 0, 1, 1], [], []>} : vector<4x16xf32>, vector<16x4xf32>, vector<4x4xf32> -> vector<4x4xf32>
    %c1 = arith.constant 1 : index
    %c0_20 = arith.constant 0 : index
    %c0_21 = arith.constant 0 : index
    %25 = vector.load %arg7[%c1, %c0_20, %c0_21] : memref<8x4x4xf32, #tpu.memory_space<vmem>>, vector<1x4x4xf32>
    %26 = vector.shape_cast %25 : vector<1x4x4xf32> to vector<4x4xf32>
    %27 = vector.shape_cast %24 : vector<4x4xf32> to vector<1x4x4xf32>
    tpu.vector_store %arg7[%c1, %c0_20, %c0_21], %27 {strides = array<i32>} : memref<8x4x4xf32, #tpu.memory_space<vmem>>, vector<1x4x4xf32>,
    %28 = vector.extract_strided_slice %15 {offsets = [2, 0, 0], sizes = [1, 16, 4], strides = [1, 1, 1]} : vector<8x16x4xf32> to vector<1x16x4xf32>
    %29 = vector.shape_cast %28 : vector<1x16x4xf32> to vector<16x4xf32>
    %cst_22 = arith.constant dense<0.000000e+00> : vector<4x4xf32>
    %30 = tpu.matmul %12, %29, %cst_22 {dimension_numbers = #tpu.dot_dimension_numbers<[1], [0], [0], [1], [0, 0, 1, 1], [], []>} : vector<4x16xf32>, vector<16x4xf32>, vector<4x4xf32> -> vector<4x4xf32>
    %c2 = arith.constant 2 : index
    %c0_23 = arith.constant 0 : index
    %c0_24 = arith.constant 0 : index
    %31 = vector.load %arg7[%c2, %c0_23, %c0_24] : memref<8x4x4xf32, #tpu.memory_space<vmem>>, vector<1x4x4xf32>
    %32 = vector.shape_cast %31 : vector<1x4x4xf32> to vector<4x4xf32>
    %33 = vector.shape_cast %30 : vector<4x4xf32> to vector<1x4x4xf32>
    tpu.vector_store %arg7[%c2, %c0_23, %c0_24], %33 {strides = array<i32>} : memref<8x4x4xf32, #tpu.memory_space<vmem>>, vector<1x4x4xf32>,
    %34 = vector.extract_strided_slice %15 {offsets = [3, 0, 0], sizes = [1, 16, 4], strides = [1, 1, 1]} : vector<8x16x4xf32> to vector<1x16x4xf32>
    %35 = vector.shape_cast %34 : vector<1x16x4xf32> to vector<16x4xf32>
    %cst_25 = arith.constant dense<0.000000e+00> : vector<4x4xf32>
    %36 = tpu.matmul %12, %35, %cst_25 {dimension_numbers = #tpu.dot_dimension_numbers<[1], [0], [0], [1], [0, 0, 1, 1], [], []>} : vector<4x16xf32>, vector<16x4xf32>, vector<4x4xf32> -> vector<4x4xf32>
    %c3 = arith.constant 3 : index
    %c0_26 = arith.constant 0 : index
    %c0_27 = arith.constant 0 : index
    %37 = vector.load %arg7[%c3, %c0_26, %c0_27] : memref<8x4x4xf32, #tpu.memory_space<vmem>>, vector<1x4x4xf32>
    %38 = vector.shape_cast %37 : vector<1x4x4xf32> to vector<4x4xf32>
    %39 = vector.shape_cast %36 : vector<4x4xf32> to vector<1x4x4xf32>
    tpu.vector_store %arg7[%c3, %c0_26, %c0_27], %39 {strides = array<i32>} : memref<8x4x4xf32, #tpu.memory_space<vmem>>, vector<1x4x4xf32>,
    %40 = vector.extract_strided_slice %15 {offsets = [4, 0, 0], sizes = [1, 16, 4], strides = [1, 1, 1]} : vector<8x16x4xf32> to vector<1x16x4xf32>
    %41 = vector.shape_cast %40 : vector<1x16x4xf32> to vector<16x4xf32>
    %cst_28 = arith.constant dense<0.000000e+00> : vector<4x4xf32>
    %42 = tpu.matmul %12, %41, %cst_28 {dimension_numbers = #tpu.dot_dimension_numbers<[1], [0], [0], [1], [0, 0, 1, 1], [], []>} : vector<4x16xf32>, vector<16x4xf32>, vector<4x4xf32> -> vector<4x4xf32>
    %c4 = arith.constant 4 : index
    %c0_29 = arith.constant 0 : index
    %c0_30 = arith.constant 0 : index
    %43 = vector.load %arg7[%c4, %c0_29, %c0_30] : memref<8x4x4xf32, #tpu.memory_space<vmem>>, vector<1x4x4xf32>
    %44 = vector.shape_cast %43 : vector<1x4x4xf32> to vector<4x4xf32>
    %45 = vector.shape_cast %42 : vector<4x4xf32> to vector<1x4x4xf32>
    tpu.vector_store %arg7[%c4, %c0_29, %c0_30], %45 {strides = array<i32>} : memref<8x4x4xf32, #tpu.memory_space<vmem>>, vector<1x4x4xf32>,
    %46 = vector.extract_strided_slice %15 {offsets = [5, 0, 0], sizes = [1, 16, 4], strides = [1, 1, 1]} : vector<8x16x4xf32> to vector<1x16x4xf32>
    %47 = vector.shape_cast %46 : vector<1x16x4xf32> to vector<16x4xf32>
    %cst_31 = arith.constant dense<0.000000e+00> : vector<4x4xf32>
    %48 = tpu.matmul %12, %47, %cst_31 {dimension_numbers = #tpu.dot_dimension_numbers<[1], [0], [0], [1], [0, 0, 1, 1], [], []>} : vector<4x16xf32>, vector<16x4xf32>, vector<4x4xf32> -> vector<4x4xf32>
    %c5 = arith.constant 5 : index
    %c0_32 = arith.constant 0 : index
    %c0_33 = arith.constant 0 : index
    %49 = vector.load %arg7[%c5, %c0_32, %c0_33] : memref<8x4x4xf32, #tpu.memory_space<vmem>>, vector<1x4x4xf32>
    %50 = vector.shape_cast %49 : vector<1x4x4xf32> to vector<4x4xf32>
    %51 = vector.shape_cast %48 : vector<4x4xf32> to vector<1x4x4xf32>
    tpu.vector_store %arg7[%c5, %c0_32, %c0_33], %51 {strides = array<i32>} : memref<8x4x4xf32, #tpu.memory_space<vmem>>, vector<1x4x4xf32>,
    %52 = vector.extract_strided_slice %15 {offsets = [6, 0, 0], sizes = [1, 16, 4], strides = [1, 1, 1]} : vector<8x16x4xf32> to vector<1x16x4xf32>
    %53 = vector.shape_cast %52 : vector<1x16x4xf32> to vector<16x4xf32>
    %cst_34 = arith.constant dense<0.000000e+00> : vector<4x4xf32>
    %54 = tpu.matmul %12, %53, %cst_34 {dimension_numbers = #tpu.dot_dimension_numbers<[1], [0], [0], [1], [0, 0, 1, 1], [], []>} : vector<4x16xf32>, vector<16x4xf32>, vector<4x4xf32> -> vector<4x4xf32>
    %c6 = arith.constant 6 : index
    %c0_35 = arith.constant 0 : index
    %c0_36 = arith.constant 0 : index
    %55 = vector.load %arg7[%c6, %c0_35, %c0_36] : memref<8x4x4xf32, #tpu.memory_space<vmem>>, vector<1x4x4xf32>
    %56 = vector.shape_cast %55 : vector<1x4x4xf32> to vector<4x4xf32>
    %57 = vector.shape_cast %54 : vector<4x4xf32> to vector<1x4x4xf32>
    tpu.vector_store %arg7[%c6, %c0_35, %c0_36], %57 {strides = array<i32>} : memref<8x4x4xf32, #tpu.memory_space<vmem>>, vector<1x4x4xf32>,
    %58 = vector.extract_strided_slice %15 {offsets = [7, 0, 0], sizes = [1, 16, 4], strides = [1, 1, 1]} : vector<8x16x4xf32> to vector<1x16x4xf32>
    %59 = vector.shape_cast %58 : vector<1x16x4xf32> to vector<16x4xf32>
    %cst_37 = arith.constant dense<0.000000e+00> : vector<4x4xf32>
    %60 = tpu.matmul %12, %59, %cst_37 {dimension_numbers = #tpu.dot_dimension_numbers<[1], [0], [0], [1], [0, 0, 1, 1], [], []>} : vector<4x16xf32>, vector<16x4xf32>, vector<4x4xf32> -> vector<4x4xf32>
    %c7 = arith.constant 7 : index
    %c0_38 = arith.constant 0 : index
    %c0_39 = arith.constant 0 : index
    %61 = vector.load %arg7[%c7, %c0_38, %c0_39] : memref<8x4x4xf32, #tpu.memory_space<vmem>>, vector<1x4x4xf32>
    %62 = vector.shape_cast %61 : vector<1x4x4xf32> to vector<4x4xf32>
    %63 = vector.shape_cast %60 : vector<4x4xf32> to vector<1x4x4xf32>
    tpu.vector_store %arg7[%c7, %c0_38, %c0_39], %63 {strides = array<i32>} : memref<8x4x4xf32, #tpu.memory_space<vmem>>, vector<1x4x4xf32>,
    return
  }
  func.func @transform_0(%arg0: i32) -> (i32, i32) {
    %c0_i32 = arith.constant 0 : i32
    %c0_i32_0 = arith.constant 0 : i32
    %c0_i32_1 = arith.constant 0 : i32
    return %c0_i32, %c0_i32_0 : i32, i32
  }
  func.func @transform_1(%arg0: i32) -> (i32, i32) {
    %c0_i32 = arith.constant 0 : i32
    %c0_i32_0 = arith.constant 0 : i32
    %c0_i32_1 = arith.constant 0 : i32
    return %c0_i32, %c0_i32_0 : i32, i32
  }
  func.func @transform_2(%arg0: i32) -> (i32, i32) {
    %c0_i32 = arith.constant 0 : i32
    %c0_i32_0 = arith.constant 0 : i32
    %c0_i32_1 = arith.constant 0 : i32
    return %c0_i32, %c0_i32_0 : i32, i32
  }
  func.func @transform_3(%arg0: i32) -> (i32, i32) {
    %c0_i32 = arith.constant 0 : i32
    %c0_i32_0 = arith.constant 0 : i32
    %c0_i32_1 = arith.constant 0 : i32
    return %c0_i32, %c0_i32_0 : i32, i32
  }
  func.func @transform_4(%arg0: i32) -> (i32, i32, i32) {
    %c0_i32 = arith.constant 0 : i32
    %c0_i32_0 = arith.constant 0 : i32
    %c0_i32_1 = arith.constant 0 : i32
    return %arg0, %c0_i32, %c0_i32_0 : i32, i32, i32
  }
  func.func @transform_5(%arg0: i32) -> (i32, i32, i32) {
    %c0_i32 = arith.constant 0 : i32
    %c0_i32_0 = arith.constant 0 : i32
    %c0_i32_1 = arith.constant 0 : i32
    return %arg0, %c0_i32, %c0_i32_0 : i32, i32, i32
  }
  func.func @transform_6(%arg0: i32) -> (i32, i32, i32) {
    %c0_i32 = arith.constant 0 : i32
    %c0_i32_0 = arith.constant 0 : i32
    %c0_i32_1 = arith.constant 0 : i32
    return %arg0, %c0_i32, %c0_i32_0 : i32, i32, i32
  }
}

</mosaic_0001>

<bundles_post_ra>
// kernel: tpu_custom_call.1
= control target key start
LH: loop header
LB: loop body
LE: loop exit
PB: predicated region body
PF: predicated region fallthrough
CT: control target
= control target key end

     0   :  { %12 = vsyncpa [#allocation3], 0  ;;  %s2210_s0 = inlined_call_operand.vmem [shape: f32[16,8], index: 0, kind: input, shape index: {}]   ;;  %s2211_s1 = inlined_call_operand.vmem [shape: f32[16,8], index: 1, kind: input, shape index: {}]   ;;  %s2212_s2 = inlined_call_operand.vmem [shape: f32[4,16], index: 2, kind: input, shape index: {}]   ;;  %s2213_s3 = inlined_call_operand.vmem [shape: f32[16,4], index: 3, kind: input, shape index: {}]   ;;  %s2214_s4 = inlined_call_operand.hbm [shape: f32[8,16,16], index: 4, kind: input, shape index: {}]   ;;  %s2215_s5 = inlined_call_operand.hbm [shape: f32[8,8,8], index: 5, kind: output, shape index: {0}]   ;;  %s2216_s6 = inlined_call_operand.vmem [shape: f32[8,4,4], index: 6, kind: output, shape index: {1}]  }
   0x1   :  { %13 = vsyncpa [#allocation4], 0  ;;  %s1952_s21 = smov [#allocation2]  }
   0x2   :  { %s27_s22 = sshll.u32 %s1952_s21, 4  ;;  %s28_s22 = int_to_ptr.vmem [resolvable:$true] %s27_s22 }
   0x3   :  { %s1916_s23 = scalar_lea.vmem %s28_s22, 2048  ;;  %p1921_p1 = scmp.lt.s32.totalorder %s28_s22, %s28_s22 }
   0x4   :  { %p1917_p0 = scmp.ne.s32.totalorder %s28_s22, %s1916_s23  ;;  %p1922_p2 = scmp.lt.s32.totalorder %s1916_s23, %s1916_s23 }
   0x6   :  { %p1923_p3 = por %p1922_p2, %p1921_p1 }
   0x8   :  { %p1924_p4 = pnand %p1923_p3, %p1917_p0 }
   0xa   :  { %1927 = shalt.err (!%p1924_p4)
}
   0xb   :  { %s1953_s24 = smov 128   ;;  %s1954_s25 = smov 8  }
   0xc   :  { %33 = dma.hbm_to_vmem [thread:$0]  %s2214_s4, 2048, %s28_s22, [#allocation3], %s1953_s24, %s1953_s24, %s1954_s25  }
   0xd   :  { %1948 = dma.done.wait [#allocation3], 2048  }
   0xe   :  { %1949 = vsyncadd [#allocation3], 4294965248  ;;  %vm57_vm0 = vcmask 130048   ;;  %v56_v0 = vld [vmem:[%s2211_s1 + $0x8] sm:$0xff]  ;;  %v55_v1 = vld [vmem:[%s2211_s1] sm:$0xff]  ;;  %v1955_v46 = vmov 0.0  }
   0xf   :  { %v2005_v2 = vld [vmem:[#allocation2] sm:$0xff]  ;;  %1774 = vmatprep.subr.mxu0 %v56_v0  ;;  %v2009_v3 = vld [vmem:[#allocation2 + $0x8] sm:$0xff]  ;;  %v2011_v4 = vld [vmem:[#allocation2 + $0x10] sm:$0xff]  ;;  %vm1956_vm1 = vmmov 0   ;;  %vm892_vm2 = vcmask 64512  }
  0x10   :  { %1778 = vmatprep.mubr.msk.f32.mxu0 %vm57_vm0, %v2005_v2  ;;  %1775 = vmatpush3.msra.mxu0 %v56_v0  ;;  %v2017_v5 = vld [vmem:[#allocation2 + $0x18] sm:$0xff]  ;;  %v2019_v6 = vld [vmem:[#allocation2 + $0x20] sm:$0xff]  ;;  %v2025_v7 = vld [vmem:[#allocation2 + $0x28] sm:$0xff] }
  0x11   :  { %1776 = vmatprep.subr.mxu0 %v55_v1  ;;  %v2027_v8 = vld [vmem:[#allocation2 + $0x30] sm:$0xff]  ;;  %v2033_v9 = vld [vmem:[#allocation2 + $0x38] sm:$0xff]  ;;  %v2035_v10 = vld [vmem:[#allocation2 + $0x40] sm:$0xff] }
  0x12   :  { %1777 = vmatpush3.msra.mxu0 %v55_v1  ;;  %v2041_v11 = vld [vmem:[#allocation2 + $0x48] sm:$0xff]  ;;  %v2043_v12 = vld [vmem:[#allocation2 + $0x50] sm:$0xff]  ;;  %v2049_v13 = vld [vmem:[#allocation2 + $0x58] sm:$0xff] }
  0x13   :  { %1779 = vmatmul.mubr.msk.f32.vlgmr.msra.gmra.mxu0 %vm57_vm0, %v2009_v3  ;;  %v2051_v14 = vld [vmem:[#allocation2 + $0x60] sm:$0xff]  ;;  %v2057_v15 = vld [vmem:[#allocation2 + $0x68] sm:$0xff]  ;;  %v2059_v16 = vld [vmem:[#allocation2 + $0x70] sm:$0xff]  ;;  %1846 = vmatprep.subr.mxu0 %v1955_v46 }
  0x14   :  { %1781 = vmatprep.mubr.msk.f32.mxu0 %vm57_vm0, %v2011_v4  ;;  %v2065_v17 = vld [vmem:[#allocation2 + $0x78] sm:$0xff]  ;;  %v54_v18 = vld [vmem:[%s2210_s0 + $0x8] sm:$0xff]  ;;  %v53_v19 = vld [vmem:[%s2210_s0] sm:$0xff] }
  0x15   :  { %1802 = vmatprep.subr.mxu1 %v54_v18  ;;  %v903_v34 = vld [vmem:[%s2213_s3 + $0x8] sm:$0xff]  ;;  %v902_v39 = vld [vmem:[%s2213_s3] sm:$0xff] }
  0x16   :  { %1803 = vmatpush3.msra.mxu1 %v54_v18  ;;  %v901_v56 = vld [vmem:[%s2212_s2] sm:$0xf]  ;;  %s1957_s2 = smov [#allocation5]  }
  0x17   :  { %1782 = vmatmul.mubr.msk.f32.gmra.mxu0 %vm57_vm0, %v2017_v5  ;;  %1804 = vmatprep.subr.mxu1 %v53_v19  ;;  %s1633_s14 = sshll.u32 %s1957_s2, 4  ;;  %s1634_s14 = int_to_ptr.vmem [resolvable:$true] %s1633_s14 }
  0x18   :  { %1784 = vmatprep.mubr.msk.f32.mxu0 %vm57_vm0, %v2019_v6  ;;  %1805 = vmatpush3.msra.mxu1 %v53_v19  ;;  %s1928_s15 = scalar_lea.vmem %s1634_s14, 1024  ;;  %p1933_p6 = scmp.lt.s32.totalorder %s1634_s14, %s1634_s14 }
  0x19   :  { %1818 = vmatprep.subr.mxu1 %v903_v34  ;;  %p1929_p5 = scmp.ne.s32.totalorder %s1634_s14, %s1928_s15  ;;  %p1934_p7 = scmp.lt.s32.totalorder %s1928_s15, %s1928_s15 }
  0x1b   :  { %1785 = vmatmul.mubr.msk.f32.gmra.mxu0 %vm57_vm0, %v2025_v7  ;;  %p1935_p8 = por %p1934_p7, %p1933_p6 }
  0x1c   :  { %1787 = vmatprep.mubr.msk.f32.mxu0 %vm57_vm0, %v2027_v8 }
  0x1d   :  { %p1936_p9 = pnand %p1935_p8, %p1929_p5 }
  0x1f   :  { %1788 = vmatmul.mubr.msk.f32.gmra.mxu0 %vm57_vm0, %v2033_v9 }
  0x20   :  { %1790 = vmatprep.mubr.msk.f32.mxu0 %vm57_vm0, %v2035_v10 }
  0x23   :  { %1791 = vmatmul.mubr.msk.f32.gmra.mxu0 %vm57_vm0, %v2041_v11 }
  0x24   :  { %1793 = vmatprep.mubr.msk.f32.mxu0 %vm57_vm0, %v2043_v12 }
  0x27   :  { %1794 = vmatmul.mubr.msk.f32.gmra.mxu0 %vm57_vm0, %v2049_v13 }
  0x28   :  { %1796 = vmatprep.mubr.msk.f32.mxu0 %vm57_vm0, %v2051_v14 }
  0x2b   :  { %1797 = vmatmul.mubr.msk.f32.gmra.mxu0 %vm57_vm0, %v2057_v15 }
  0x2c   :  { %1799 = vmatprep.mubr.msk.f32.mxu0 %vm57_vm0, %v2059_v16 }
  0x2f   :  { %1800 = vmatmul.mubr.msk.f32.gmra.mxu0 %vm57_vm0, %v2065_v17 }
  0x30   :  { %1850 = vmatprep.mubr.msk.f32.mxu0 %vm1956_vm1, %v1955_v46 }
  0xd3   :  { %v1780_v20 = vpop.f32.mrf.mxu0 }
  0xd5   :  { %v172_v21 = vpop.f32.mrf.mxu0 }
  0xd6   :  { %251 = vxpose.xlu0.b32.start [1/2] (short) (narrow) %v172_v21, 8 }
  0xd7   :  { %v1783_v22 = vpop.f32.mrf.mxu0 }
  0xd9   :  { %v182_v23 = vpop.f32.mrf.mxu0 }
  0xda   :  { %252 = vxpose.xlu0.b32.end [2/2] (short) (narrow) %v1780_v20, 8  ;;  %283 = vxpose.xlu1.b32.start [1/2] (short) (narrow) %v182_v23, 8 }
  0xdb   :  { %v1786_v24 = vpop.f32.mrf.mxu0 }
  0xdd   :  { %v192_v25 = vpop.f32.mrf.mxu0 }
  0xde   :  { %284 = vxpose.xlu1.b32.end [2/2] (short) (narrow) %v1783_v22, 8  ;;  %315 = vxpose.xlu0.b32.start [1/2] (short) (narrow) %v192_v25, 8 }
  0xdf   :  { %v1789_v26 = vpop.f32.mrf.mxu0 }
  0xe1   :  { %v202_v27 = vpop.f32.mrf.mxu0 }
  0xe2   :  { %316 = vxpose.xlu0.b32.end [2/2] (short) (narrow) %v1786_v24, 8  ;;  %347 = vxpose.xlu1.b32.start [1/2] (short) (narrow) %v202_v27, 8 }
  0xe3   :  { %v1792_v28 = vpop.f32.mrf.mxu0 }
  0xe5   :  { %v212_v29 = vpop.f32.mrf.mxu0 }
  0xe6   :  { %348 = vxpose.xlu1.b32.end [2/2] (short) (narrow) %v1789_v26, 8  ;;  %379 = vxpose.xlu0.b32.start [1/2] (short) (narrow) %v212_v29, 8 }
  0xe7   :  { %v1795_v30 = vpop.f32.mrf.mxu0 }
  0xe9   :  { %v222_v31 = vpop.f32.mrf.mxu0 }
  0xea   :  { %380 = vxpose.xlu0.b32.end [2/2] (short) (narrow) %v1792_v28, 8  ;;  %411 = vxpose.xlu1.b32.start [1/2] (short) (narrow) %v222_v31, 8 }
  0xeb   :  { %v1798_v32 = vpop.f32.mrf.mxu0 }
  0xed   :  { %v232_v33 = vpop.f32.mrf.mxu0 }
  0xee   :  { %412 = vxpose.xlu1.b32.end [2/2] (short) (narrow) %v1795_v30, 8  ;;  %443 = vxpose.xlu0.b32.start [1/2] (short) (narrow) %v232_v33, 8 }
  0xef   :  { %v1801_v35 = vpop.f32.mrf.mxu0 }
  0xf1   :  { %v242_v36 = vpop.f32.mrf.mxu0 }
  0xf2   :  { %444 = vxpose.xlu0.b32.end [2/2] (short) (narrow) %v1798_v32, 8  ;;  %475 = vxpose.xlu1.b32.start [1/2] (short) (narrow) %v242_v36, 8 }
  0xf6   :  { %476 = vxpose.xlu1.b32.end [2/2] (short) (narrow) %v1801_v35, 8 }
 0x152   :  { %v267_v37 = vpop.trf.xlu0 }
 0x153   :  { %1806 = vmatprep.mubr.msk.f32.mxu1 %vm57_vm0, %v267_v37 }
 0x156   :  { %v299_v38 = vpop.trf.xlu1 }
 0x157   :  { %1807 = vmatmul.mubr.msk.f32.vlgmr.msra.gmra.mxu1 %vm57_vm0, %v299_v38 }
 0x158   :  { %1819 = vmatpush3.msra.mxu1 %v903_v34 }
 0x159   :  { %1820 = vmatprep.subr.mxu1 %v902_v39 }
 0x15a   :  { %v331_v40 = vpop.trf.xlu0  ;;  %1821 = vmatpush3.msra.mxu1 %v902_v39 }
 0x15b   :  { %1809 = vmatprep.mubr.msk.f32.mxu1 %vm57_vm0, %v331_v40  ;;  %1881 = vmatprep.subr.mxu1 %v1955_v46 }
 0x15e   :  { %v363_v41 = vpop.trf.xlu1 }
 0x15f   :  { %1810 = vmatmul.mubr.msk.f32.gmra.mxu1 %vm57_vm0, %v363_v41 }
 0x162   :  { %v395_v42 = vpop.trf.xlu0 }
 0x163   :  { %1812 = vmatprep.mubr.msk.f32.mxu1 %vm57_vm0, %v395_v42 }
 0x166   :  { %v427_v43 = vpop.trf.xlu1 }
 0x167   :  { %1813 = vmatmul.mubr.msk.f32.gmra.mxu1 %vm57_vm0, %v427_v43 }
 0x16a   :  { %v459_v44 = vpop.trf.xlu0 }
 0x16b   :  { %1815 = vmatprep.mubr.msk.f32.mxu1 %vm57_vm0, %v459_v44 }
 0x16e   :  { %v491_v45 = vpop.trf.xlu1 }
 0x16f   :  { %1816 = vmatmul.mubr.msk.f32.gmra.mxu1 %vm57_vm0, %v491_v45 }
 0x170   :  { %1822 = vmatprep.mubr.msk.f32.mxu1 %vm57_vm0, %v2005_v2 }
 0x173   :  { %1823 = vmatmul.mubr.msk.f32.vlgmr.msra.gmra.mxu1 %vm57_vm0, %v2009_v3 }
 0x174   :  { %1825 = vmatprep.mubr.msk.f32.mxu1 %vm57_vm0, %v2011_v4 }
 0x177   :  { %1826 = vmatmul.mubr.msk.f32.gmra.mxu1 %vm57_vm0, %v2017_v5 }
 0x178   :  { %1828 = vmatprep.mubr.msk.f32.mxu1 %vm57_vm0, %v2019_v6 }
 0x17b   :  { %1829 = vmatmul.mubr.msk.f32.gmra.mxu1 %vm57_vm0, %v2025_v7 }
 0x17c   :  { %1831 = vmatprep.mubr.msk.f32.mxu1 %vm57_vm0, %v2027_v8 }
 0x17f   :  { %1832 = vmatmul.mubr.msk.f32.gmra.mxu1 %vm57_vm0, %v2033_v9 }
 0x180   :  { %1834 = vmatprep.mubr.msk.f32.mxu1 %vm57_vm0, %v2035_v10 }
 0x183   :  { %1835 = vmatmul.mubr.msk.f32.gmra.mxu1 %vm57_vm0, %v2041_v11 }
 0x184   :  { %1837 = vmatprep.mubr.msk.f32.mxu1 %vm57_vm0, %v2043_v12 }
 0x187   :  { %1838 = vmatmul.mubr.msk.f32.gmra.mxu1 %vm57_vm0, %v2049_v13 }
 0x188   :  { %1840 = vmatprep.mubr.msk.f32.mxu1 %vm57_vm0, %v2051_v14 }
 0x18b   :  { %1841 = vmatmul.mubr.msk.f32.gmra.mxu1 %vm57_vm0, %v2057_v15 }
 0x18c   :  { %1843 = vmatprep.mubr.msk.f32.mxu1 %vm57_vm0, %v2059_v16 }
 0x18f   :  { %1844 = vmatmul.mubr.msk.f32.gmra.mxu1 %vm57_vm0, %v2065_v17 }
 0x190   :  { %1885 = vmatprep.mubr.msk.f32.mxu1 %vm1956_vm1, %v1955_v46 }
 0x217   :  { %v1808_v47 = vpop.f32.mrf.mxu1 }
 0x218   :  { %668 = vxpose.xlu1.b32.start.end [1/1] (short) (narrow) %v1808_v47, 8 }
 0x219   :  { %v597_v48 = vpop.f32.mrf.mxu1 }
 0x21a   :  { %636 = vxpose.xlu0.b32.start.end [1/1] (short) (narrow) %v597_v48, 8 }
 0x21f   :  { %v1811_v49 = vpop.f32.mrf.mxu1 }
 0x220   :  { %732 = vxpose.xlu1.b32.start.end [1/1] (short) (narrow) %v1811_v49, 8 }
 0x221   :  { %v607_v50 = vpop.f32.mrf.mxu1 }
 0x222   :  { %700 = vxpose.xlu0.b32.start.end [1/1] (short) (narrow) %v607_v50, 8 }
 0x227   :  { %v1814_v51 = vpop.f32.mrf.mxu1 }
 0x228   :  { %796 = vxpose.xlu1.b32.start.end [1/1] (short) (narrow) %v1814_v51, 8 }
 0x229   :  { %v617_v52 = vpop.f32.mrf.mxu1 }
 0x22a   :  { %764 = vxpose.xlu0.b32.start.end [1/1] (short) (narrow) %v617_v52, 8 }
 0x22f   :  { %v1817_v53 = vpop.f32.mrf.mxu1 }
 0x230   :  { %860 = vxpose.xlu1.b32.start.end [1/1] (short) (narrow) %v1817_v53, 8 }
 0x231   :  { %v627_v54 = vpop.f32.mrf.mxu1 }
 0x232   :  { %828 = vxpose.xlu0.b32.start.end [1/1] (short) (narrow) %v627_v54, 8 }
 0x233   :  { %v1824_v55 = vpop.f32.mrf.mxu1 }
 0x234   :  { %1847 = vmatpush3.msra.mxu0 %v1824_v55 }
 0x235   :  { %v970_v57 = vpop.f32.mrf.mxu1  ;;  %1848 = vmatprep.subr.mxu0 %v1955_v46 }
 0x236   :  { %1849 = vmatpush3.msra.mxu0 %v970_v57 }
 0x237   :  { %v1827_v58 = vpop.f32.mrf.mxu1  ;;  %1853 = vmatprep.subr.mxu0 %v1955_v46  ;;  %1851 = vmatmul.mubr.msk.f32.vlgmr.msra.gmra.mxu0 %vm57_vm0, %v901_v56 }
 0x238   :  { %1854 = vmatpush3.msra.mxu0 %v1827_v58  ;;  %1857 = vmatprep.mubr.msk.f32.mxu0 %vm1956_vm1, %v1955_v46 }
 0x239   :  { %v980_v59 = vpop.f32.mrf.mxu1  ;;  %1855 = vmatprep.subr.mxu0 %v1955_v46 }
 0x23a   :  { %1856 = vmatpush3.msra.mxu0 %v980_v59 }
 0x23b   :  { %v1830_v60 = vpop.f32.mrf.mxu1  ;;  %1860 = vmatprep.subr.mxu0 %v1955_v46  ;;  %1858 = vmatmul.mubr.msk.f32.vlgmr.msra.gmra.mxu0 %vm57_vm0, %v901_v56 }
 0x23c   :  { %1861 = vmatpush3.msra.mxu0 %v1830_v60  ;;  %1864 = vmatprep.mubr.msk.f32.mxu0 %vm1956_vm1, %v1955_v46 }
 0x23d   :  { %v990_v61 = vpop.f32.mrf.mxu1  ;;  %1862 = vmatprep.subr.mxu0 %v1955_v46 }
 0x23e   :  { %1863 = vmatpush3.msra.mxu0 %v990_v61 }
 0x23f   :  { %v1833_v62 = vpop.f32.mrf.mxu1  ;;  %1867 = vmatprep.subr.mxu0 %v1955_v46  ;;  %1865 = vmatmul.mubr.msk.f32.vlgmr.msra.gmra.mxu0 %vm57_vm0, %v901_v56 }
 0x240   :  { %1868 = vmatpush3.msra.mxu0 %v1833_v62  ;;  %1871 = vmatprep.mubr.msk.f32.mxu0 %vm1956_vm1, %v1955_v46 }
 0x241   :  { %v1000_v63 = vpop.f32.mrf.mxu1  ;;  %1869 = vmatprep.subr.mxu0 %v1955_v46 }
 0x242   :  { %1870 = vmatpush3.msra.mxu0 %v1000_v63 }
 0x243   :  { %v1836_v0 = vpop.f32.mrf.mxu1  ;;  %1874 = vmatprep.subr.mxu0 %v1955_v46  ;;  %1872 = vmatmul.mubr.msk.f32.vlgmr.msra.gmra.mxu0 %vm57_vm0, %v901_v56 }
 0x244   :  { %1875 = vmatpush3.msra.mxu0 %v1836_v0  ;;  %1878 = vmatprep.mubr.msk.f32.mxu0 %vm1956_vm1, %v1955_v46 }
 0x245   :  { %v1010_v1 = vpop.f32.mrf.mxu1  ;;  %1876 = vmatprep.subr.mxu0 %v1955_v46 }
 0x246   :  { %1877 = vmatpush3.msra.mxu0 %v1010_v1 }
 0x247   :  { %v1839_v2 = vpop.f32.mrf.mxu1  ;;  %1888 = vmatprep.subr.mxu0 %v1955_v46  ;;  %1879 = vmatmul.mubr.msk.f32.vlgmr.msra.gmra.mxu0 %vm57_vm0, %v901_v56 }
 0x248   :  { %1882 = vmatpush3.msra.mxu1 %v1839_v2  ;;  %1892 = vmatprep.mubr.msk.f32.mxu0 %vm1956_vm1, %v1955_v46 }
 0x249   :  { %v1020_v3 = vpop.f32.mrf.mxu1  ;;  %1883 = vmatprep.subr.mxu1 %v1955_v46 }
 0x24a   :  { %1884 = vmatpush3.msra.mxu1 %v1020_v3 }
 0x24b   :  { %v1842_v4 = vpop.f32.mrf.mxu1  ;;  %1895 = vmatprep.subr.mxu1 %v1955_v46  ;;  %1886 = vmatmul.mubr.msk.f32.vlgmr.msra.gmra.mxu1 %vm57_vm0, %v901_v56 }
 0x24c   :  { %1889 = vmatpush3.msra.mxu0 %v1842_v4  ;;  %1899 = vmatprep.mubr.msk.f32.mxu1 %vm1956_vm1, %v1955_v46 }
 0x24d   :  { %v1030_v5 = vpop.f32.mrf.mxu1  ;;  %1890 = vmatprep.subr.mxu0 %v1955_v46 }
 0x24e   :  { %1891 = vmatpush3.msra.mxu0 %v1030_v5 }
 0x24f   :  { %v1845_v6 = vpop.f32.mrf.mxu1  ;;  %1893 = vmatmul.mubr.msk.f32.vlgmr.msra.gmra.mxu0 %vm57_vm0, %v901_v56 }
 0x250   :  { %1896 = vmatpush3.msra.mxu1 %v1845_v6 }
 0x251   :  { %v1040_v7 = vpop.f32.mrf.mxu1  ;;  %1897 = vmatprep.subr.mxu1 %v1955_v46 }
 0x252   :  { %1898 = vmatpush3.msra.mxu1 %v1040_v7 }
 0x253   :  { %1900 = vmatmul.mubr.msk.f32.vlgmr.msra.gmra.mxu1 %vm57_vm0, %v901_v56 }
 0x294   :  { %v684_v8 = vpop.trf.xlu1 }
 0x295   :  { %894 = vst.msk [vmem:[#allocation5 + $0x8] sm:$0xff] %vm892_vm2, %v684_v8 }
 0x296   :  { %v652_v9 = vpop.trf.xlu0 }
 0x297   :  { %893 = vst.msk [vmem:[#allocation5] sm:$0xff] %vm892_vm2, %v652_v9 }
 0x29c   :  { %v748_v10 = vpop.trf.xlu1 }
 0x29d   :  { %896 = vst.msk [vmem:[#allocation5 + $0x18] sm:$0xff] %vm892_vm2, %v748_v10 }
 0x29e   :  { %v716_v11 = vpop.trf.xlu0 }
 0x29f   :  { %895 = vst.msk [vmem:[#allocation5 + $0x10] sm:$0xff] %vm892_vm2, %v716_v11 }
 0x2a4   :  { %v812_v12 = vpop.trf.xlu1 }
 0x2a5   :  { %898 = vst.msk [vmem:[#allocation5 + $0x28] sm:$0xff] %vm892_vm2, %v812_v12 }
 0x2a6   :  { %v780_v13 = vpop.trf.xlu0 }
 0x2a7   :  { %897 = vst.msk [vmem:[#allocation5 + $0x20] sm:$0xff] %vm892_vm2, %v780_v13 }
 0x2ac   :  { %v876_v14 = vpop.trf.xlu1 }
 0x2ad   :  { %900 = vst.msk [vmem:[#allocation5 + $0x38] sm:$0xff] %vm892_vm2, %v876_v14 }
 0x2ae   :  { %v844_v15 = vpop.trf.xlu0 }
 0x2af   :  { %899 = vst.msk [vmem:[#allocation5 + $0x30] sm:$0xff] %vm892_vm2, %v844_v15 }
 0x2b0   :  { %1939 = shalt.err (!%p1936_p9)
}
 0x2b1   :  { %1639 = dma.vmem_to_hbm [thread:$0]  %s1634_s14, 1024, %s2215_s5, [#allocation4], %s1953_s24, %s1953_s24, %s1954_s25   ;;  %vm1122_vm3 = vcmask 27648  }
 0x2f7   :  { %v1118_v16 = vpop.f32.mrf.mxu0 }
 0x2f8   :  { %1123 = vst.msk [vmem:[%s2216_s6] sm:$0xf] %vm1122_vm3, %v1118_v16 }
 0x2f9   :  { %v1852_v17 = vpop.f32.mrf.mxu0 }
 0x2fb   :  { %v1190_v18 = vpop.f32.mrf.mxu0 }
 0x2fc   :  { %1691 = vst.msk [vmem:[%s2216_s6 + $0x4] sm:$0xf] %vm1122_vm3, %v1190_v18 }
 0x2fd   :  { %v1859_v19 = vpop.f32.mrf.mxu0 }
 0x2ff   :  { %v1262_v20 = vpop.f32.mrf.mxu0 }
 0x300   :  { %1693 = vst.msk [vmem:[%s2216_s6 + $0x8] sm:$0xf] %vm1122_vm3, %v1262_v20 }
 0x301   :  { %v1866_v21 = vpop.f32.mrf.mxu0 }
 0x303   :  { %v1334_v22 = vpop.f32.mrf.mxu0 }
 0x304   :  { %1695 = vst.msk [vmem:[%s2216_s6 + $0xc] sm:$0xf] %vm1122_vm3, %v1334_v22 }
 0x305   :  { %v1873_v23 = vpop.f32.mrf.mxu0 }
 0x307   :  { %v1406_v24 = vpop.f32.mrf.mxu0 }
 0x308   :  { %1697 = vst.msk [vmem:[%s2216_s6 + $0x10] sm:$0xf] %vm1122_vm3, %v1406_v24 }
 0x309   :  { %v1880_v25 = vpop.f32.mrf.mxu0 }
 0x30b   :  { %v1478_v26 = vpop.f32.mrf.mxu1 }
 0x30c   :  { %1699 = vst.msk [vmem:[%s2216_s6 + $0x14] sm:$0xf] %vm1122_vm3, %v1478_v26 }
 0x30d   :  { %v1887_v27 = vpop.f32.mrf.mxu1 }
 0x30f   :  { %v1550_v28 = vpop.f32.mrf.mxu0 }
 0x310   :  { %1701 = vst.msk [vmem:[%s2216_s6 + $0x18] sm:$0xf] %vm1122_vm3, %v1550_v28 }
 0x311   :  { %v1894_v29 = vpop.f32.mrf.mxu0 }
 0x313   :  { %v1622_v30 = vpop.f32.mrf.mxu1 }
 0x314   :  { %1703 = vst.msk [vmem:[%s2216_s6 + $0x1c] sm:$0xf] %vm1122_vm3, %v1622_v30 }
 0x315   :  { %v1901_v31 = vpop.f32.mrf.mxu1 }
 0x316   :  { %1950 = dma.done.wait [#allocation4], 1024  }
 0x317   :  { %1951 = vsyncadd [#allocation4], 4294966272 }
 0x318   :  { %1647 = vsyncpa [#allocation3], 1 }
 0x319   :  { %1648 = vsyncpa [#allocation4], 1 }

</bundles_post_ra>
